<compile_context>
chip_gen: v6e
topology: v6e:2x2x1
jax: 0.10.0
libtpu: 0.0.40
codegen_flags: <defaults>
</compile_context>

<pallas_src>
import functools

import jax
import jax.numpy as jnp
import numpy as np
from jax.experimental import pallas as pl
from jax.experimental.pallas import tpu as pltpu


def _fused_set_function_kernel(x_ref, w_ref, b_ref, w4_ref, b4_ref, o_ref,
                               *, D, K, N, TB):
    """TB support sets per grid step.

    x_ref  : (TB, S, D)        support embeddings, S = K * N, class-contiguous
    w_ref  : (6D, 2D)          [w1 (D,2D) ; w2 (2D,2D) ; w3a (2D,2D) ; w3b (D,2D)]
    b_ref  : (3, 2D)           [b1 ; b2 ; b3]
    w4_ref : (2D, OUT)
    b4_ref : (1, OUT)
    o_ref  : (TB, (K+2)*OUT)   per-set lanes = [task | class_0..class_{K-1} | balance]
    """
    S = K * N
    OUT = w4_ref.shape[1]

    # Flatten TB sets so every matmul runs once over TB*S rows (free relabel:
    # S=8 is a whole sublane group; D stays the lane dim).
    x = x_ref[...].reshape(TB * S, D)                                # (TB*S, D)

    w = w_ref[...]
    w1, w2 = w[0:D, :], w[D:3 * D, :]
    w3a, w3b = w[3 * D:5 * D, :], w[5 * D:6 * D, :]
    b = b_ref[...]
    b1, b2, b3 = b[0:1, :], b[1:2, :], b[2:3, :]
    w4 = w4_ref[...]
    b4 = b4_ref[...]

    # psi: Linear(D,2D) -> ReLU -> Linear(2D,2D) -> ReLU, all TB*S rows at once.
    h = jnp.maximum(jnp.dot(x, w1, preferred_element_type=jnp.float32) + b1, 0.0)
    psi = jnp.maximum(jnp.dot(h, w2, preferred_element_type=jnp.float32) + b2, 0.0)

    # rho's first Linear, concat-free AND pre-sum-free (linearity of W3):
    # matmul every row first, group-sum afterwards.
    z = (jnp.dot(psi, w3a, preferred_element_type=jnp.float32)
         + jnp.dot(x, w3b, preferred_element_type=jnp.float32))      # (TB*S, 2D), no b3 yet
    z3 = z.reshape(TB, S, 2 * D)                                     # free relabel

    # Per-class sums: contiguous sublane-slice reductions.  z_total = sum of
    # the class sums (fp-order differs from the reference's direct S-row sum
    # only at the ~1e-6 level for these magnitudes).
    z_class = [jnp.sum(z3[:, c * N:(c + 1) * N, :], axis=1) for c in range(K)]
    z_total = z_class[0]
    for c in range(1, K):
        z_total = z_total + z_class[c]                               # (TB, 2D)

    def rho_head(z_rows):                                            # (TB, 2D) -> (TB, OUT)
        h2 = jnp.maximum(z_rows + b3, 0.0)
        return jnp.dot(h2, w4, preferred_element_type=jnp.float32) + b4

    rho_total = rho_head(z_total)            # shared pre-activation for task & balance

    # Direct slice stores into the lane-dense (TB, (K+2)*OUT) output tile
    # (no concatenate temp, no (K+2, 32)-shaped masked output tiles).
    o_ref[:, 0:OUT] = jnp.clip(rho_total, 0.0, 6.0) / 6.0                       # task
    for c in range(K):                                                           # classes
        o_ref[:, (1 + c) * OUT:(2 + c) * OUT] = (
            jnp.clip(rho_head(z_class[c]), 0.0, 6.0) / 6.0)
    o_ref[:, (K + 1) * OUT:(K + 2) * OUT] = jnp.maximum(rho_total, 0.0)          # balance


def init_params(key, input_dimension, output_dimension):
    d, o = input_dimension, output_dimension
    ks = jax.random.split(key, 9)
    scale = 0.1
    return {
        # psi
        "w1": jax.random.normal(ks[0], (d, 2 * d), jnp.float32) * scale,
        "b1": jax.random.normal(ks[1], (1, 2 * d), jnp.float32) * scale,
        "w2": jax.random.normal(ks[2], (2 * d, 2 * d), jnp.float32) * scale,
        "b2": jax.random.normal(ks[3], (1, 2 * d), jnp.float32) * scale,
        # rho first Linear(3D, 2D) split into psi-part / x-part rows
        "w3a": jax.random.normal(ks[4], (2 * d, 2 * d), jnp.float32) * scale,
        "w3b": jax.random.normal(ks[5], (d, 2 * d), jnp.float32) * scale,
        "b3": jax.random.normal(ks[6], (1, 2 * d), jnp.float32) * scale,
        "w4": jax.random.normal(ks[7], (2 * d, o), jnp.float32) * scale,
        "b4": jax.random.normal(ks[8], (1, o), jnp.float32) * scale,
    }


def pack_params(params):
    """Pack 9 parameter tensors into 4 operands (done ONCE at setup)."""
    w_blob = jnp.concatenate(
        [params["w1"], params["w2"], params["w3a"], params["w3b"]], axis=0)   # (6D, 2D)
    b_blob = jnp.concatenate(
        [params["b1"], params["b2"], params["b3"]], axis=0)                   # (3, 2D)
    return w_blob, b_blob, params["w4"], params["b4"]


def _pick_tb(B, S, target_rows=512):
    """Sets per grid step.  Big enough that TB*S is a few hundred MXU LHS rows
    (amortizes the ~600-cycle per-step overhead), while keeping >=2 parallel
    grid steps when B allows (so v7x's two TensorCores both get work; on
    single-TC v5e/v6e the extra step costs ~0.35 us).  TB must divide B and
    satisfy the output sublane-tile rule (TB % 8 == 0 or TB == B)."""
    cap = max(1, target_rows // max(S, 1))
    legal = [tb for tb in range(1, B + 1)
             if B % tb == 0 and (tb % 8 == 0 or tb == B)]
    two_step = [tb for tb in legal if tb <= cap and B // tb >= 2]
    if two_step:
        return max(two_step)
    in_cap = [tb for tb in legal if tb <= cap]
    if in_cap:
        return max(in_cap)
    return min(legal)


def set_function_forward_all(packed, support_embeddings, *, K, N, sets_per_step=None):
    """Fused forward for all three levels.

    support_embeddings: (S, D) single set, or (B, S, D) batch of sets.
    Returns (B, K+2, OUT) (or (K+2, OUT) for a single set), rows =
    [task | class_0..class_{K-1} | balance].
    """
    w_blob, b_blob, w4, b4 = packed
    single = support_embeddings.ndim == 2
    x = support_embeddings[None] if single else support_embeddings
    B, S, D = x.shape
    OUT = w4.shape[1]
    assert K * N == S, "support rows must be class-contiguous with S = K*N"

    TB = sets_per_step if sets_per_step is not None else _pick_tb(B, S)
    assert B % TB == 0 and (TB % 8 == 0 or TB == B)
    OUTW = (K + 2) * OUT

    kernel = functools.partial(_fused_set_function_kernel, D=D, K=K, N=N, TB=TB)
    out_flat = pl.pallas_call(
        kernel,
        out_shape=jax.ShapeDtypeStruct((B, OUTW), jnp.float32),
        grid_spec=pltpu.PrefetchScalarGridSpec(
            num_scalar_prefetch=0,
            grid=(B // TB,),
            in_specs=[
                pl.BlockSpec((TB, S, D), lambda g: (g, 0, 0)),      # TB sets of x per step
                pl.BlockSpec((6 * D, 2 * D), lambda g: (0, 0)),     # weight blob (resident)
                pl.BlockSpec((3, 2 * D), lambda g: (0, 0)),         # bias blob (resident)
                pl.BlockSpec((2 * D, OUT), lambda g: (0, 0)),       # w4 (resident)
                pl.BlockSpec((1, OUT), lambda g: (0, 0)),           # b4 (resident)
            ],
            out_specs=pl.BlockSpec((TB, OUTW), lambda g: (g, 0)),   # lane-dense output slab
        ),
        compiler_params=pltpu.CompilerParams(
            dimension_semantics=("parallel",)),                     # shards steps across v7x TCs
    )(x, w_blob, b_blob, w4, b4)

    out = out_flat.reshape(B, K + 2, OUT)   # layout plumbing outside the kernel (free)
    return out[0] if single else out


def reference_forward(params, x, level, K=None, N=None):
    """Pure-JAX reference matching the PyTorch forward semantics exactly."""
    h = jnp.maximum(x @ params["w1"] + params["b1"], 0.0)
    psi = jnp.maximum(h @ params["w2"] + params["b2"], 0.0)
    rho_in = jnp.concatenate([psi, x], axis=1)                 # (S, 3D)
    if level == "class":
        rho_in = rho_in.reshape(K, N, -1).sum(axis=1)          # (K, 3D)
    else:
        rho_in = rho_in.sum(axis=0, keepdims=True)             # (1, 3D)
    w3 = jnp.concatenate([params["w3a"], params["w3b"]], axis=0)
    h2 = jnp.maximum(rho_in @ w3 + params["b3"], 0.0)
    out = h2 @ params["w4"] + params["b4"]
    if level == "balance":
        return jnp.maximum(out, 0.0)
    return jnp.clip(out, 0.0, 6.0) / 6.0


if __name__ == "__main__":
    K, N = 2, 4          # args.K, args.N for the 'class' level
    D = 32               # input_dimension
    OUT = 32             # output_dimension
    S = K * N            # support embeddings per set
    B = 16               # sets; picker -> TB=8 sets/step, grid=(2,) parallel steps

    key = jax.random.PRNGKey(0)
    k_param, k_x = jax.random.split(key)
    params = init_params(k_param, D, OUT)
    packed = pack_params(params)
    support_batch = jax.random.normal(k_x, (B, S, D), jnp.float32)

    # One fused launch for all B sets and all three levels.
    out = set_function_forward_all(packed, support_batch, K=K, N=N)
    out = jax.block_until_ready(out)                          # (B, K+2, OUT)
    assert out.shape == (B, K + 2, OUT)

    for b in range(B):
        x = support_batch[b]
        task_ref = reference_forward(params, x, "task", K, N)
        class_ref = reference_forward(params, x, "class", K, N)
        bal_ref = reference_forward(params, x, "balance", K, N)
        np.testing.assert_allclose(np.asarray(out[b, 0:1]), np.asarray(task_ref),
                                   rtol=1e-5, atol=1e-5)
        np.testing.assert_allclose(np.asarray(out[b, 1:1 + K]), np.asarray(class_ref),
                                   rtol=1e-5, atol=1e-5)
        np.testing.assert_allclose(np.asarray(out[b, 1 + K:2 + K]), np.asarray(bal_ref),
                                   rtol=1e-5, atol=1e-5)

    # Single-set path (module-equivalent interface) also works (TB=1, grid=(1,)).
    single = set_function_forward_all(packed, support_batch[0], K=K, N=N)
    single = jax.block_until_ready(single)
    np.testing.assert_allclose(np.asarray(single), np.asarray(out[0]),
                               rtol=1e-5, atol=1e-5)

    print("KERNEL_OK")
</pallas_src>

<mosaic_0001>
module attributes {stable_mosaic.version = 11 : i64} {
  func.func @_fused_set_function_kernel(%arg0: i32, %arg1: memref<8x8x32xf32, #tpu.memory_space<vmem>>, %arg2: memref<192x64xf32, #tpu.memory_space<vmem>>, %arg3: memref<3x64xf32, #tpu.memory_space<vmem>>, %arg4: memref<64x32xf32, #tpu.memory_space<vmem>>, %arg5: memref<1x32xf32, #tpu.memory_space<vmem>>, %arg6: memref<8x128xf32, #tpu.memory_space<vmem>>) attributes {dimension_semantics = [#tpu.dimension_semantics<parallel>], iteration_bounds = array<i64: 2>, scalar_prefetch = 0 : i64, scratch_operands = 0 : i64, tpu.core_type = #tpu.core_type<tc>, window_params = [{transform_indices = @transform_0, window_bounds = array<i64: 8, 8, 32>}, {pipeline_mode = #tpu.pipeline_mode<synchronous>, transform_indices = @transform_1, window_bounds = array<i64: 192, 64>}, {pipeline_mode = #tpu.pipeline_mode<synchronous>, transform_indices = @transform_2, window_bounds = array<i64: 3, 64>}, {pipeline_mode = #tpu.pipeline_mode<synchronous>, transform_indices = @transform_3, window_bounds = array<i64: 64, 32>}, {pipeline_mode = #tpu.pipeline_mode<synchronous>, transform_indices = @transform_4, window_bounds = array<i64: 1, 32>}, {transform_indices = @transform_5, window_bounds = array<i64: 8, 128>}]} {
    %c0 = arith.constant 0 : index
    %c0_0 = arith.constant 0 : index
    %c0_1 = arith.constant 0 : index
    %0 = vector.load %arg1[%c0, %c0_0, %c0_1] : memref<8x8x32xf32, #tpu.memory_space<vmem>>, vector<8x8x32xf32>
    %1 = vector.shape_cast %0 : vector<8x8x32xf32> to vector<64x32xf32>
    %c0_2 = arith.constant 0 : index
    %c0_3 = arith.constant 0 : index
    %2 = vector.load %arg2[%c0_2, %c0_3] : memref<192x64xf32, #tpu.memory_space<vmem>>, vector<192x64xf32>
    %3 = vector.extract_strided_slice %2 {offsets = [0, 0], sizes = [32, 64], strides = [1, 1]} : vector<192x64xf32> to vector<32x64xf32>
    %4 = vector.extract_strided_slice %2 {offsets = [32, 0], sizes = [64, 64], strides = [1, 1]} : vector<192x64xf32> to vector<64x64xf32>
    %5 = vector.extract_strided_slice %2 {offsets = [96, 0], sizes = [64, 64], strides = [1, 1]} : vector<192x64xf32> to vector<64x64xf32>
    %6 = vector.extract_strided_slice %2 {offsets = [160, 0], sizes = [32, 64], strides = [1, 1]} : vector<192x64xf32> to vector<32x64xf32>
    %c0_4 = arith.constant 0 : index
    %c0_5 = arith.constant 0 : index
    %7 = vector.load %arg3[%c0_4, %c0_5] : memref<3x64xf32, #tpu.memory_space<vmem>>, vector<3x64xf32>
    %8 = vector.extract_strided_slice %7 {offsets = [0, 0], sizes = [1, 64], strides = [1, 1]} : vector<3x64xf32> to vector<1x64xf32>
    %9 = vector.extract_strided_slice %7 {offsets = [1, 0], sizes = [1, 64], strides = [1, 1]} : vector<3x64xf32> to vector<1x64xf32>
    %10 = vector.extract_strided_slice %7 {offsets = [2, 0], sizes = [1, 64], strides = [1, 1]} : vector<3x64xf32> to vector<1x64xf32>
    %c0_6 = arith.constant 0 : index
    %c0_7 = arith.constant 0 : index
    %11 = vector.load %arg4[%c0_6, %c0_7] : memref<64x32xf32, #tpu.memory_space<vmem>>, vector<64x32xf32>
    %c0_8 = arith.constant 0 : index
    %c0_9 = arith.constant 0 : index
    %12 = vector.load %arg5[%c0_8, %c0_9] : memref<1x32xf32, #tpu.memory_space<vmem>>, vector<1x32xf32>
    %cst = arith.constant dense<0.000000e+00> : vector<64x64xf32>
    %13 = tpu.matmul %1, %3, %cst {dimension_numbers = #tpu.dot_dimension_numbers<[1], [0], [0], [1], [0, 0, 1, 1], [], []>} : vector<64x32xf32>, vector<32x64xf32>, vector<64x64xf32> -> vector<64x64xf32>
    %14 = vector.broadcast %8 : vector<1x64xf32> to vector<64x64xf32>
    %15 = arith.addf %13, %14 : vector<64x64xf32>
    %cst_10 = arith.constant 0.000000e+00 : f32
    %16 = vector.broadcast %cst_10 : f32 to vector<64x64xf32>
    %17 = arith.maximumf %15, %16 : vector<64x64xf32>
    %cst_11 = arith.constant dense<0.000000e+00> : vector<64x64xf32>
    %18 = tpu.matmul %17, %4, %cst_11 {dimension_numbers = #tpu.dot_dimension_numbers<[1], [0], [0], [1], [0, 0, 1, 1], [], []>} : vector<64x64xf32>, vector<64x64xf32>, vector<64x64xf32> -> vector<64x64xf32>
    %19 = vector.broadcast %9 : vector<1x64xf32> to vector<64x64xf32>
    %20 = arith.addf %18, %19 : vector<64x64xf32>
    %cst_12 = arith.constant 0.000000e+00 : f32
    %21 = vector.broadcast %cst_12 : f32 to vector<64x64xf32>
    %22 = arith.maximumf %20, %21 : vector<64x64xf32>
    %cst_13 = arith.constant dense<0.000000e+00> : vector<64x64xf32>
    %23 = tpu.matmul %22, %5, %cst_13 {dimension_numbers = #tpu.dot_dimension_numbers<[1], [0], [0], [1], [0, 0, 1, 1], [], []>} : vector<64x64xf32>, vector<64x64xf32>, vector<64x64xf32> -> vector<64x64xf32>
    %cst_14 = arith.constant dense<0.000000e+00> : vector<64x64xf32>
    %24 = tpu.matmul %1, %6, %cst_14 {dimension_numbers = #tpu.dot_dimension_numbers<[1], [0], [0], [1], [0, 0, 1, 1], [], []>} : vector<64x32xf32>, vector<32x64xf32>, vector<64x64xf32> -> vector<64x64xf32>
    %25 = arith.addf %23, %24 : vector<64x64xf32>
    %26 = vector.shape_cast %25 : vector<64x64xf32> to vector<8x8x64xf32>
    %27 = vector.extract_strided_slice %26 {offsets = [0, 0, 0], sizes = [8, 4, 64], strides = [1, 1, 1]} : vector<8x8x64xf32> to vector<8x4x64xf32>
    %cst_15 = arith.constant dense<0.000000e+00> : vector<8x64xf32>
    %28 = vector.multi_reduction <add>, %27, %cst_15 [1] : vector<8x4x64xf32> to vector<8x64xf32>
    %29 = vector.extract_strided_slice %26 {offsets = [0, 4, 0], sizes = [8, 4, 64], strides = [1, 1, 1]} : vector<8x8x64xf32> to vector<8x4x64xf32>
    %cst_16 = arith.constant dense<0.000000e+00> : vector<8x64xf32>
    %30 = vector.multi_reduction <add>, %29, %cst_16 [1] : vector<8x4x64xf32> to vector<8x64xf32>
    %31 = arith.addf %28, %30 : vector<8x64xf32>
    %32 = vector.broadcast %10 : vector<1x64xf32> to vector<8x64xf32>
    %33 = arith.addf %31, %32 : vector<8x64xf32>
    %cst_17 = arith.constant 0.000000e+00 : f32
    %34 = vector.broadcast %cst_17 : f32 to vector<8x64xf32>
    %35 = arith.maximumf %33, %34 : vector<8x64xf32>
    %cst_18 = arith.constant dense<0.000000e+00> : vector<8x32xf32>
    %36 = tpu.matmul %35, %11, %cst_18 {dimension_numbers = #tpu.dot_dimension_numbers<[1], [0], [0], [1], [0, 0, 1, 1], [], []>} : vector<8x64xf32>, vector<64x32xf32>, vector<8x32xf32> -> vector<8x32xf32>
    %37 = vector.broadcast %12 : vector<1x32xf32> to vector<8x32xf32>
    %38 = arith.addf %36, %37 : vector<8x32xf32>
    %cst_19 = arith.constant 0.000000e+00 : f32
    %cst_20 = arith.constant 6.000000e+00 : f32
    %39 = vector.broadcast %cst_19 : f32 to vector<8x32xf32>
    %40 = arith.maximumf %39, %38 : vector<8x32xf32>
    %41 = vector.broadcast %cst_20 : f32 to vector<8x32xf32>
    %42 = arith.minimumf %41, %40 : vector<8x32xf32>
    %cst_21 = arith.constant 6.000000e+00 : f32
    %43 = vector.broadcast %cst_21 : f32 to vector<8x32xf32>
    %44 = arith.divf %42, %43 : vector<8x32xf32>
    %c0_22 = arith.constant 0 : index
    %c0_23 = arith.constant 0 : index
    %45 = vector.load %arg6[%c0_22, %c0_23] : memref<8x128xf32, #tpu.memory_space<vmem>>, vector<8x32xf32>
    tpu.vector_store %arg6[%c0_22, %c0_23], %44 {strides = array<i32>} : memref<8x128xf32, #tpu.memory_space<vmem>>, vector<8x32xf32>,
    %46 = vector.broadcast %10 : vector<1x64xf32> to vector<8x64xf32>
    %47 = arith.addf %28, %46 : vector<8x64xf32>
    %cst_24 = arith.constant 0.000000e+00 : f32
    %48 = vector.broadcast %cst_24 : f32 to vector<8x64xf32>
    %49 = arith.maximumf %47, %48 : vector<8x64xf32>
    %cst_25 = arith.constant dense<0.000000e+00> : vector<8x32xf32>
    %50 = tpu.matmul %49, %11, %cst_25 {dimension_numbers = #tpu.dot_dimension_numbers<[1], [0], [0], [1], [0, 0, 1, 1], [], []>} : vector<8x64xf32>, vector<64x32xf32>, vector<8x32xf32> -> vector<8x32xf32>
    %51 = vector.broadcast %12 : vector<1x32xf32> to vector<8x32xf32>
    %52 = arith.addf %50, %51 : vector<8x32xf32>
    %cst_26 = arith.constant 0.000000e+00 : f32
    %cst_27 = arith.constant 6.000000e+00 : f32
    %53 = vector.broadcast %cst_26 : f32 to vector<8x32xf32>
    %54 = arith.maximumf %53, %52 : vector<8x32xf32>
    %55 = vector.broadcast %cst_27 : f32 to vector<8x32xf32>
    %56 = arith.minimumf %55, %54 : vector<8x32xf32>
    %cst_28 = arith.constant 6.000000e+00 : f32
    %57 = vector.broadcast %cst_28 : f32 to vector<8x32xf32>
    %58 = arith.divf %56, %57 : vector<8x32xf32>
    %c0_29 = arith.constant 0 : index
    %c32 = arith.constant 32 : index
    %59 = vector.load %arg6[%c0_29, %c32] : memref<8x128xf32, #tpu.memory_space<vmem>>, vector<8x32xf32>
    tpu.vector_store %arg6[%c0_29, %c32], %58 {strides = array<i32>} : memref<8x128xf32, #tpu.memory_space<vmem>>, vector<8x32xf32>,
    %60 = vector.broadcast %10 : vector<1x64xf32> to vector<8x64xf32>
    %61 = arith.addf %30, %60 : vector<8x64xf32>
    %cst_30 = arith.constant 0.000000e+00 : f32
    %62 = vector.broadcast %cst_30 : f32 to vector<8x64xf32>
    %63 = arith.maximumf %61, %62 : vector<8x64xf32>
    %cst_31 = arith.constant dense<0.000000e+00> : vector<8x32xf32>
    %64 = tpu.matmul %63, %11, %cst_31 {dimension_numbers = #tpu.dot_dimension_numbers<[1], [0], [0], [1], [0, 0, 1, 1], [], []>} : vector<8x64xf32>, vector<64x32xf32>, vector<8x32xf32> -> vector<8x32xf32>
    %65 = vector.broadcast %12 : vector<1x32xf32> to vector<8x32xf32>
    %66 = arith.addf %64, %65 : vector<8x32xf32>
    %cst_32 = arith.constant 0.000000e+00 : f32
    %cst_33 = arith.constant 6.000000e+00 : f32
    %67 = vector.broadcast %cst_32 : f32 to vector<8x32xf32>
    %68 = arith.maximumf %67, %66 : vector<8x32xf32>
    %69 = vector.broadcast %cst_33 : f32 to vector<8x32xf32>
    %70 = arith.minimumf %69, %68 : vector<8x32xf32>
    %cst_34 = arith.constant 6.000000e+00 : f32
    %71 = vector.broadcast %cst_34 : f32 to vector<8x32xf32>
    %72 = arith.divf %70, %71 : vector<8x32xf32>
    %c0_35 = arith.constant 0 : index
    %c64 = arith.constant 64 : index
    %73 = vector.load %arg6[%c0_35, %c64] : memref<8x128xf32, #tpu.memory_space<vmem>>, vector<8x32xf32>
    tpu.vector_store %arg6[%c0_35, %c64], %72 {strides = array<i32>} : memref<8x128xf32, #tpu.memory_space<vmem>>, vector<8x32xf32>,
    %cst_36 = arith.constant 0.000000e+00 : f32
    %74 = vector.broadcast %cst_36 : f32 to vector<8x32xf32>
    %75 = arith.maximumf %38, %74 : vector<8x32xf32>
    %c0_37 = arith.constant 0 : index
    %c96 = arith.constant 96 : index
    %76 = vector.load %arg6[%c0_37, %c96] : memref<8x128xf32, #tpu.memory_space<vmem>>, vector<8x32xf32>
    tpu.vector_store %arg6[%c0_37, %c96], %75 {strides = array<i32>} : memref<8x128xf32, #tpu.memory_space<vmem>>, vector<8x32xf32>,
    return
  }
  func.func @transform_0(%arg0: i32) -> (i32, i32, i32) {
    %c0_i32 = arith.constant 0 : i32
    %c0_i32_0 = arith.constant 0 : i32
    %c0_i32_1 = arith.constant 0 : i32
    return %arg0, %c0_i32, %c0_i32_0 : i32, i32, i32
  }
  func.func @transform_1(%arg0: i32) -> (i32, i32) {
    %c0_i32 = arith.constant 0 : i32
    %c0_i32_0 = arith.constant 0 : i32
    %c0_i32_1 = arith.constant 0 : i32
    return %c0_i32, %c0_i32_0 : i32, i32
  }
  func.func @transform_2(%arg0: i32) -> (i32, i32) {
    %c0_i32 = arith.constant 0 : i32
    %c0_i32_0 = arith.constant 0 : i32
    %c0_i32_1 = arith.constant 0 : i32
    return %c0_i32, %c0_i32_0 : i32, i32
  }
  func.func @transform_3(%arg0: i32) -> (i32, i32) {
    %c0_i32 = arith.constant 0 : i32
    %c0_i32_0 = arith.constant 0 : i32
    %c0_i32_1 = arith.constant 0 : i32
    return %c0_i32, %c0_i32_0 : i32, i32
  }
  func.func @transform_4(%arg0: i32) -> (i32, i32) {
    %c0_i32 = arith.constant 0 : i32
    %c0_i32_0 = arith.constant 0 : i32
    %c0_i32_1 = arith.constant 0 : i32
    return %c0_i32, %c0_i32_0 : i32, i32
  }
  func.func @transform_5(%arg0: i32) -> (i32, i32) {
    %c0_i32 = arith.constant 0 : i32
    %c0_i32_0 = arith.constant 0 : i32
    return %arg0, %c0_i32 : i32, i32
  }
}

</mosaic_0001>

<bundles_post_ra>
// kernel: tpu_custom_call.1
= control target key start
LH: loop header
LB: loop body
LE: loop exit
PB: predicated region body
PF: predicated region fallthrough
CT: control target
= control target key end

     0   :  { %10 = vsyncpa [#allocation3], 0  ;;  %s2247_s0 = inlined_call_operand.vmem [shape: f32[16,8,32], index: 0, kind: input, shape index: {}]   ;;  %s2248_s1 = inlined_call_operand.vmem [shape: f32[192,64], index: 1, kind: input, shape index: {}]   ;;  %s2249_s2 = inlined_call_operand.vmem [shape: f32[3,64], index: 2, kind: input, shape index: {}]   ;;  %s2250_s3 = inlined_call_operand.vmem [shape: f32[64,32], index: 3, kind: input, shape index: {}]   ;;  %s2251_s4 = inlined_call_operand.vmem [shape: f32[1,32], index: 4, kind: input, shape index: {}]   ;;  %s2252_s5 = inlined_call_operand.hbm [shape: f32[16,128], index: 5, kind: output, shape index: {}]  }
   0x1   :  { %12 = vsyncpa [#allocation3 + $0x1], 0  ;;  %s1804_s18 = smov 0   ;;  %s1806_s19 = smov 0  }
   0x2   :  { %s1808_s20 = smov 0   ;;  %s1810_s21 = smov 0  }
   0x3 LB: > { %s1825_s22 = sadd.s32 4294967295, %s1766_s21   ;;  %s1379_s23 = sadd.s32 4294967294, %s1766_s21   ;;  %s1766_s21 = sphi %s1810_s21, %s2258_s21   ;;  %s1762_s20 = sphi %s1808_s20, %s2257_s20   ;;  %s1758_s19 = sphi %s1806_s19, %s2256_s19   ;;  %s1754_s18 = sphi %s1804_s18, %s2255_s18  }
   0x4   : > { %s1829_s24 = sadd.s32 1, %s1766_s21   ;;  %s135_s25 = sadd.s32 1, %s1762_s20 }
   0x5   : > { %s132_s26 = ssub.s32 %s1766_s21, %s1829_s24  ;;  %p145_p0 = scmp.ne.s32.totalorder %s1762_s20, %s1758_s19 }
   0x6   : > { %p133_p1 = scmp.eq.s32.totalorder %s132_s26, 0  ;;  %p146_p2 = scmp.eq.s32.totalorder %s1825_s22, 1 }
   0x7   : > { %p151_p3 = scmp.ne.s32.totalorder %s1758_s19, %s1754_s18  ;;  %p152_p4 = scmp.eq.s32.totalorder %s1379_s23, 1 }
   0x8   : > { %s1840_s27 = scalar_select %p133_p1, %s1762_s20, %s135_s25  }
   0x9   : > { %p1842_p5 = por %p146_p2, %p145_p0  ;;  %p1846_p6 = por %p152_p4, %p151_p3 }
   0xa   : > { %p1382_p7 = scmp.ge.s32.totalorder %s1766_s21, 1  ;;  %p191_p8 = scmp.lt.s32.totalorder %s1766_s21, 3 }
   0xc   : > { %p192_p9 = pnand %p1382_p7, %p191_p8 }
   0xd   : > { %s1384_s9 = sshll.u32 (!%p192_p9), %s1825_s22, 3  ;;  %s1770_s14 = smov (!%p192_p9), 32  }
   0xe   : > { %195 = sbr.rel (%p192_p9) target bundleno = 1027 (0x403), region = 40  ;;  %p220_p10 = scmp.lt.s32.totalorder (!%p192_p9), %s1384_s9, 15 }
   0xf   : > { %s216_s15 = sand.u32 (!%p192_p9), 1, %s1758_s19   ;;  %s1771_s17 = smov (!%p192_p9), 96  }
  0x10   : > { %s1383_s16 = sshll.u32 (!%p192_p9), %s216_s15, 3  ;;  %s1772_s25 = smov (!%p192_p9), 64  }
  0x11   : > { %s218_s23 = scalar_lea.vmem (!%p192_p9), [#allocation2], %s1383_s16  ;;  %s1307_s10 = scalar_lea.sflag (!%p192_p9), [#allocation3], %s216_s15 }
  0x12   : > { %s1320_s30 = sshll.u32 (!%p192_p9), %s218_s23, 4  ;;  %s2206_s30 = int_to_ptr.vmem [resolvable:$true] %s1320_s30 }
  0x13   : > { %v236_v0 = vld [vmem:[%s2248_s1 + $0x18] sm:$0xff]  ;;  %v235_v1 = vld [vmem:[%s2248_s1 + $0x10] sm:$0xff]  ;;  %v234_v4 = vld [vmem:[%s2248_s1 + $0x8] sm:$0xff]  ;;  %s2260_s9 = smov (!%p220_p10, %s1384_s9), 15  ;;  %vm271_vm0 = vcmask 261120   ;;  %v267_v24 = vlaneseq  ;;  %vm413_vm1 = vcmask 523264  }
  0x14   : > { %1509 = vmatprep.subr.mxu0 %v236_v0  ;;  %v244_v2 = vld [vmem:[%s2248_s1 + $0x58] sm:$0xff]  ;;  %v243_v3 = vld [vmem:[%s2248_s1 + $0x50] sm:$0xff]  ;;  %v242_v5 = vld [vmem:[%s2248_s1 + $0x48] sm:$0xff]  ;;  %s1385_s26 = sshll.u32 %s2260_s9, 3  ;;  %vm1769_vm2 = vmmov 0   ;;  %vm785_vm3 = vcmask 519168  }
  0x15   : > { %1510 = vmatpush3.msra.mxu0 %v236_v0  ;;  %1529 = vmatprep.subr.mxu1 %v244_v2  ;;  %v233_v6 = vld [vmem:[%s2248_s1] sm:$0xff]  ;;  %s223_s7 = scalar_lea.vmem %s2247_s0, %s1385_s26  ;;  %v240_v16 = vld [vmem:[%s2248_s1 + $0x38] sm:$0xff]  ;;  %v239_v17 = vld [vmem:[%s2248_s1 + $0x30] sm:$0xff]  ;;  %v1934_v25 = vshrl.u32 %v267_v24, 7  ;;  %vm965_vm4 = vcmask 1041409   ;;  %vm968_vm5 = vcmask 1042434  }
  0x16   : > { %1511 = vmatprep.subr.mxu0 %v235_v1  ;;  %1530 = vmatpush3.msra.mxu1 %v244_v2  ;;  %v241_v7 = vld [vmem:[%s2248_s1 + $0x40] sm:$0xff]  ;;  %v1880_v9 = vld [vmem:[%s223_s7 + $0x8] sm:$0xff]  ;;  %v1882_v10 = vld [vmem:[%s223_s7 + $0x10] sm:$0xff]  ;;  %vm971_vm6 = vcmask 1043459   ;;  %vm974_vm7 = vcmask 1044484   ;;  %vm977_vm8 = vcmask 1045509  }
  0x17   : > { %1512 = vmatpush3.msra.mxu0 %v235_v1  ;;  %1531 = vmatprep.subr.mxu1 %v243_v3  ;;  %v225_v8 = vld [vmem:[%s223_s7] sm:$0xff]  ;;  %v1889_v11 = vld [vmem:[%s223_s7 + $0x18] sm:$0xff]  ;;  %v1897_v13 = vld [vmem:[%s223_s7 + $0x28] sm:$0xff]  ;;  %v269_v26 = vsub.s32 0, %v1934_v25  ;;  %v411_v61 = vsub.s32 1, %v1934_v25  ;;  %vm980_vm9 = vcmask 1046534  }
  0x18   : > { %1513 = vmatprep.subr.mxu0 %v234_v4  ;;  %1532 = vmatpush3.msra.mxu1 %v243_v3  ;;  %v1891_v12 = vld [vmem:[%s223_s7 + $0x20] sm:$0xff]  ;;  %v1899_v14 = vld [vmem:[%s223_s7 + $0x30] sm:$0xff]  ;;  %v1905_v15 = vld [vmem:[%s223_s7 + $0x38] sm:$0xff]  ;;  %vm983_vm10 = vcmask 1047559   ;;  %vm1179_vm11 = vcmask 523520   ;;  %s1423_s26 = sshll.u32 %s1825_s22, 7 }
  0x19   : > { %1514 = vmatpush3.msra.mxu0 %v234_v4  ;;  %1533 = vmatprep.subr.mxu1 %v242_v5  ;;  %v238_v18 = vld [vmem:[%s2248_s1 + $0x28] sm:$0xff]  ;;  %v237_v19 = vld [vmem:[%s2248_s1 + $0x20] sm:$0xff]  ;;  %v256_v20 = vld [vmem:[%s2248_s1 + $0xb8] sm:$0xff]  ;;  %vm1298_vm12 = vcmask 785920   ;;  %vm1304_vm13 = vcmask 1048320   ;;  %s2204_s8 = scalar_lea.hbm %s2252_s5, %s1423_s26  ;;  %s1706_s22 = scalar_lea.vmem %s2206_s30, 128 }
  0x1a   : > { %1515 = vmatprep.subr.mxu0 %v233_v6  ;;  %1534 = vmatpush3.msra.mxu1 %v242_v5  ;;  %v252_v21 = vld [vmem:[%s2248_s1 + $0x98] sm:$0xff]  ;;  %v255_v22 = vld [vmem:[%s2248_s1 + $0xb0] sm:$0xff]  ;;  %v254_v23 = vld [vmem:[%s2248_s1 + $0xa8] sm:$0xff]  ;;  %p1707_p11 = scmp.ne.s32.totalorder %s2206_s30, %s1706_s22  ;;  %s1773_s9 = smov [#allocation2]  }
  0x1b   : > { %1516 = vmatpush3.msra.mxu0 %v233_v6  ;;  %1517 = vmatprep.mubr.msk.f32.mxu0 %vm271_vm0, %v225_v8  ;;  %v1940_v27 = vld [vmem:[%s2249_s2] sm:$0x7]  ;;  %v251_v39 = vld [vmem:[%s2248_s1 + $0x90] sm:$0xff]  ;;  %v250_v42 = vld [vmem:[%s2248_s1 + $0x88] sm:$0xff]  ;;  %s1710_s11 = sshll.u32 %s1773_s9, 4  ;;  %s1711_s11 = int_to_ptr.vmem [resolvable:$false] %s1710_s11 }
  0x1c   : > { %1518 = vmatmul.mubr.msk.f32.vlgmr.msra.gmra.mxu0 %vm271_vm0, %v1880_v9  ;;  %1535 = vmatprep.subr.mxu1 %v241_v7  ;;  %v270_v28 = vrot.slane %v1940_v27, %v269_v26  ;;  %v249_v47 = vld [vmem:[%s2248_s1 + $0x80] sm:$0xff]  ;;  %v248_v50 = vld [vmem:[%s2248_s1 + $0x78] sm:$0xff]  ;;  %v247_v57 = vld [vmem:[%s2248_s1 + $0x70] sm:$0xff]  ;;  %v412_v62 = vrot.slane %v1940_v27, %v411_v61  ;;  %p1708_p12 = pnand %p1707_p11, %p1842_p5  ;;  %s1712_s12 = scalar_lea.vmem %s1711_s11, 256 }
  0x1d   : > { %1520 = vmatprep.mubr.msk.f32.mxu0 %vm271_vm0, %v1882_v10  ;;  %1536 = vmatpush3.msra.mxu1 %v241_v7  ;;  %v253_v58 = vld [vmem:[%s2248_s1 + $0xa0] sm:$0xff]  ;;  %v246_v59 = vld [vmem:[%s2248_s1 + $0x68] sm:$0xff]  ;;  %v2003_v24 = vld [vmem:[%s2250_s3 + $0x38] sm:$0xff]  ;;  %p1713_p0 = scmp.lt.s32.totalorder %s2206_s30, %s1711_s11  ;;  %p1714_p1 = scmp.lt.s32.totalorder %s1712_s12, %s1706_s22 }
  0x1e   : > { %1537 = vmatprep.subr.mxu1 %v240_v16  ;;  %1557 = vmatprep.subr.mxu0 %v256_v20  ;;  %v245_v60 = vld [vmem:[%s2248_s1 + $0x60] sm:$0xff]  ;;  %v2012_v26 = vld [vmem:[%s2250_s3 + $0x30] sm:$0xff]  ;;  %p1709_p13 = pneg %p1708_p12 }
  0x1f   : > { %1538 = vmatpush3.msra.mxu1 %v240_v16  ;;  %1558 = vmatpush3.msra.mxu0 %v256_v20  ;;  %p1715_p2 = por %p1714_p1, %p1713_p0 }
  0x20   : > { %1521 = vmatmul.mubr.msk.f32.gmra.mxu0 %vm271_vm0, %v1889_v11  ;;  %1539 = vmatprep.subr.mxu1 %v239_v17 }
  0x21   : > { %1523 = vmatprep.mubr.msk.f32.mxu0 %vm271_vm0, %v1891_v12  ;;  %1540 = vmatpush3.msra.mxu1 %v239_v17  ;;  %p1716_p3 = pnand %p1715_p2, %p1709_p13 }
  0x22   : > { %1541 = vmatprep.subr.mxu1 %v238_v18  ;;  %1559 = vmatprep.subr.mxu0 %v255_v22 }
  0x23   : > { %1542 = vmatpush3.msra.mxu1 %v238_v18  ;;  %1560 = vmatpush3.msra.mxu0 %v255_v22 }
  0x24   : > { %1524 = vmatmul.mubr.msk.f32.gmra.mxu0 %vm271_vm0, %v1897_v13  ;;  %1543 = vmatprep.subr.mxu1 %v237_v19 }
  0x25   : > { %1526 = vmatprep.mubr.msk.f32.mxu0 %vm271_vm0, %v1899_v14  ;;  %1544 = vmatpush3.msra.mxu1 %v237_v19 }
  0x26   : > { %1577 = vmatprep.subr.mxu1 %v252_v21  ;;  %1561 = vmatprep.subr.mxu0 %v254_v23 }
  0x27   : > { %1562 = vmatpush3.msra.mxu0 %v254_v23  ;;  %v1768_v23 = vmov 0.0  }
  0x28   : > { %1527 = vmatmul.mubr.msk.f32.gmra.mxu0 %vm271_vm0, %v1905_v15  ;;  %1563 = vmatprep.subr.mxu0 %v253_v58 }
  0x29   : > { %1565 = vmatprep.mubr.msk.f32.mxu0 %vm271_vm0, %v225_v8  ;;  %1564 = vmatpush3.msra.mxu0 %v253_v58 }
  0x2a   : > { %1605 = vmatprep.subr.mxu0 %v1768_v23 }
  0x2c   : > { %1566 = vmatmul.mubr.msk.f32.vlgmr.msra.gmra.mxu0 %vm271_vm0, %v1880_v9 }
  0x2d   : > { %1568 = vmatprep.mubr.msk.f32.mxu0 %vm271_vm0, %v1882_v10  ;;  %1606 = vmatpush3.msra.mxu0 %v2003_v24 }
  0x2e   : > { %1607 = vmatprep.subr.mxu0 %v1768_v23 }
  0x2f   : > { %1608 = vmatpush3.msra.mxu0 %v2012_v26 }
  0x30   : > { %1569 = vmatmul.mubr.msk.f32.gmra.mxu0 %vm271_vm0, %v1889_v11  ;;  %1609 = vmatprep.subr.mxu0 %v1768_v23 }
  0x31   : > { %1571 = vmatprep.mubr.msk.f32.mxu0 %vm271_vm0, %v1891_v12 }
  0x34   : > { %1572 = vmatmul.mubr.msk.f32.gmra.mxu0 %vm271_vm0, %v1897_v13 }
  0x35   : > { %1574 = vmatprep.mubr.msk.f32.mxu0 %vm271_vm0, %v1899_v14 }
  0x38   : > { %1575 = vmatmul.mubr.msk.f32.gmra.mxu0 %vm271_vm0, %v1905_v15 }
  0x39   : > { %1621 = vmatprep.mubr.msk.f32.mxu0 %vm1769_vm2, %v1768_v23 }
  0xdc   : > { %v1519_v29 = vpop.f32.mrf.mxu0 }
  0xdd   : > { %v368_v30 = vadd.f32 %v1519_v29, %v270_v28  ;;  %v2030_v29 = vld [vmem:[%s2250_s3 + $0x20] sm:$0xff] }
  0xde   : > { %v362_v31 = vpop.f32.mrf.mxu0 }
  0xdf   : > { %v363_v32 = vadd.f32 %v362_v31, %v270_v28  ;;  %v402_v35 = vmax.f32 %v368_v30, 0.0  ;;  %v2039_v30 = vld [vmem:[%s2250_s3 + $0x18] sm:$0xff]  ;;  %v2048_v31 = vld [vmem:[%s2250_s3 + $0x10] sm:$0xff] }
  0xe0   : > { %v1522_v33 = vpop.f32.mrf.mxu0 }
  0xe1   : > { %v401_v34 = vmax.f32 %v363_v32, 0.0  ;;  %v378_v36 = vadd.f32 %v1522_v33, %v270_v28  ;;  %v2057_v32 = vld [vmem:[%s2250_s3 + $0x8] sm:$0xff]  ;;  %v2066_v33 = vld [vmem:[%s2250_s3] sm:$0xff] }
  0xe2   : > { %v372_v37 = vpop.f32.mrf.mxu0 }
  0xe3   : > { %v373_v38 = vadd.f32 %v372_v37, %v270_v28  ;;  %1545 = vmatprep.mubr.msk.f32.mxu1 %vm413_vm1, %v401_v34  ;;  %v404_v43 = vmax.f32 %v378_v36, 0.0 }
  0xe4   : > { %v1525_v40 = vpop.f32.mrf.mxu0  ;;  %1546 = vmatmul.mubr.msk.f32.vlgmr.msra.gmra.mxu1 %vm413_vm1, %v402_v35 }
  0xe5   : > { %v403_v41 = vmax.f32 %v373_v38, 0.0  ;;  %1578 = vmatpush3.msra.mxu1 %v252_v21  ;;  %v388_v44 = vadd.f32 %v1525_v40, %v270_v28 }
  0xe6   : > { %v382_v45 = vpop.f32.mrf.mxu0  ;;  %1579 = vmatprep.subr.mxu1 %v251_v39 }
  0xe7   : > { %v383_v46 = vadd.f32 %v382_v45, %v270_v28  ;;  %1548 = vmatprep.mubr.msk.f32.mxu1 %vm413_vm1, %v403_v41  ;;  %1580 = vmatpush3.msra.mxu1 %v251_v39  ;;  %v406_v51 = vmax.f32 %v388_v44, 0.0 }
  0xe8   : > { %v1528_v48 = vpop.f32.mrf.mxu0  ;;  %1549 = vmatmul.mubr.msk.f32.gmra.mxu1 %vm413_vm1, %v404_v43  ;;  %1581 = vmatprep.subr.mxu1 %v250_v42 }
  0xe9   : > { %v405_v49 = vmax.f32 %v383_v46, 0.0  ;;  %1582 = vmatpush3.msra.mxu1 %v250_v42  ;;  %v398_v52 = vadd.f32 %v1528_v48, %v270_v28 }
  0xea   : > { %v392_v53 = vpop.f32.mrf.mxu0  ;;  %1583 = vmatprep.subr.mxu1 %v249_v47 }
  0xeb   : > { %v393_v54 = vadd.f32 %v392_v53, %v270_v28  ;;  %1551 = vmatprep.mubr.msk.f32.mxu1 %vm413_vm1, %v405_v49  ;;  %1584 = vmatpush3.msra.mxu1 %v249_v47  ;;  %v408_v56 = vmax.f32 %v398_v52, 0.0  ;;  %v2021_v28 = vld [vmem:[%s2250_s3 + $0x28] sm:$0xff] }
  0xec   : > { %1552 = vmatmul.mubr.msk.f32.gmra.mxu1 %vm413_vm1, %v406_v51  ;;  %1585 = vmatprep.subr.mxu1 %v248_v50  ;;  %v1567_v34 = vpop.f32.mrf.mxu0 }
  0xed   : > { %v407_v55 = vmax.f32 %v393_v54, 0.0  ;;  %1586 = vmatpush3.msra.mxu1 %v248_v50  ;;  %1610 = vmatpush3.msra.mxu0 %v2021_v28 }
  0xee   : > { %1587 = vmatprep.subr.mxu1 %v247_v57  ;;  %1611 = vmatprep.subr.mxu0 %v1768_v23  ;;  %v617_v35 = vpop.f32.mrf.mxu0 }
  0xef   : > { %1554 = vmatprep.mubr.msk.f32.mxu1 %vm413_vm1, %v407_v55  ;;  %1588 = vmatpush3.msra.mxu1 %v247_v57 }
  0xf0   : > { %1555 = vmatmul.mubr.msk.f32.gmra.mxu1 %vm413_vm1, %v408_v56  ;;  %1589 = vmatprep.subr.mxu1 %v246_v59  ;;  %v1570_v38 = vpop.f32.mrf.mxu0 }
  0xf1   : > { %1590 = vmatpush3.msra.mxu1 %v246_v59  ;;  %1612 = vmatpush3.msra.mxu0 %v2030_v29 }
  0xf2   : > { %1591 = vmatprep.subr.mxu1 %v245_v60  ;;  %1613 = vmatprep.subr.mxu0 %v1768_v23  ;;  %v627_v46 = vpop.f32.mrf.mxu0 }
  0xf3   : > { %1592 = vmatpush3.msra.mxu1 %v245_v60  ;;  %1614 = vmatpush3.msra.mxu0 %v2039_v30 }
  0xf4   : > { %1624 = vmatprep.subr.mxu1 %v1768_v23  ;;  %1615 = vmatprep.subr.mxu0 %v1768_v23 }
  0xf5   : > { %1616 = vmatpush3.msra.mxu0 %v2048_v31 }
  0xf6   : > { %1617 = vmatprep.subr.mxu0 %v1768_v23 }
  0xf7   : > { %1618 = vmatpush3.msra.mxu0 %v2057_v32 }
  0xf8   : > { %1619 = vmatprep.subr.mxu0 %v1768_v23 }
  0xf9   : > { %1620 = vmatpush3.msra.mxu0 %v2066_v33 }
  0xfa   : > { %1643 = vmatprep.subr.mxu0 %v1768_v23 }
 0x1a4   : > { %v1547_v63 = vpop.f32.mrf.mxu1 }
 0x1a5   : > { %v510_v0 = vadd.f32 %v1547_v63, %v412_v62 }
 0x1a6   : > { %v504_v1 = vpop.f32.mrf.mxu1 }
 0x1a7   : > { %v505_v2 = vadd.f32 %v504_v1, %v412_v62  ;;  %v544_v5 = vmax.f32 %v510_v0, 0.0 }
 0x1a8   : > { %v1550_v3 = vpop.f32.mrf.mxu1 }
 0x1a9   : > { %v543_v4 = vmax.f32 %v505_v2, 0.0  ;;  %v520_v6 = vadd.f32 %v1550_v3, %v412_v62 }
 0x1aa   : > { %v514_v7 = vpop.f32.mrf.mxu1 }
 0x1ab   : > { %v515_v8 = vadd.f32 %v514_v7, %v412_v62  ;;  %1593 = vmatprep.mubr.msk.f32.mxu1 %vm413_vm1, %v543_v4  ;;  %v546_v11 = vmax.f32 %v520_v6, 0.0 }
 0x1ac   : > { %v1553_v9 = vpop.f32.mrf.mxu1  ;;  %1594 = vmatmul.mubr.msk.f32.vlgmr.msra.gmra.mxu1 %vm413_vm1, %v544_v5 }
 0x1ad   : > { %v545_v10 = vmax.f32 %v515_v8, 0.0  ;;  %v530_v12 = vadd.f32 %v1553_v9, %v412_v62  ;;  %1625 = vmatpush3.msra.mxu1 %v2003_v24 }
 0x1ae   : > { %v524_v13 = vpop.f32.mrf.mxu1  ;;  %1626 = vmatprep.subr.mxu1 %v1768_v23 }
 0x1af   : > { %v525_v14 = vadd.f32 %v524_v13, %v412_v62  ;;  %1596 = vmatprep.mubr.msk.f32.mxu1 %vm413_vm1, %v545_v10  ;;  %v548_v17 = vmax.f32 %v530_v12, 0.0  ;;  %1627 = vmatpush3.msra.mxu1 %v2012_v26  ;;  %v932_v12 = vsub.s32 2, %v1934_v25 }
 0x1b0   : > { %v1556_v15 = vpop.f32.mrf.mxu1  ;;  %1597 = vmatmul.mubr.msk.f32.gmra.mxu1 %vm413_vm1, %v546_v11  ;;  %1628 = vmatprep.subr.mxu1 %v1768_v23 }
 0x1b1   : > { %v547_v16 = vmax.f32 %v525_v14, 0.0  ;;  %v540_v18 = vadd.f32 %v1556_v15, %v412_v62  ;;  %1629 = vmatpush3.msra.mxu1 %v2021_v28  ;;  %v1573_v15 = vpop.f32.mrf.mxu0 }
 0x1b2   : > { %v534_v19 = vpop.f32.mrf.mxu1  ;;  %1630 = vmatprep.subr.mxu1 %v1768_v23 }
 0x1b3   : > { %v535_v20 = vadd.f32 %v534_v19, %v412_v62  ;;  %1599 = vmatprep.mubr.msk.f32.mxu1 %vm413_vm1, %v547_v16  ;;  %v550_v22 = vmax.f32 %v540_v18, 0.0  ;;  %1631 = vmatpush3.msra.mxu1 %v2030_v29 }
 0x1b4   : > { %1600 = vmatmul.mubr.msk.f32.gmra.mxu1 %vm413_vm1, %v548_v17  ;;  %1632 = vmatprep.subr.mxu1 %v1768_v23 }
 0x1b5   : > { %v549_v21 = vmax.f32 %v535_v20, 0.0  ;;  %1633 = vmatpush3.msra.mxu1 %v2039_v30 }
 0x1b6   : > { %1634 = vmatprep.subr.mxu1 %v1768_v23 }
 0x1b7   : > { %1602 = vmatprep.mubr.msk.f32.mxu1 %vm413_vm1, %v549_v21  ;;  %1635 = vmatpush3.msra.mxu1 %v2048_v31 }
 0x1b8   : > { %1603 = vmatmul.mubr.msk.f32.gmra.mxu1 %vm413_vm1, %v550_v22  ;;  %1636 = vmatprep.subr.mxu1 %v1768_v23 }
 0x1b9   : > { %1637 = vmatpush3.msra.mxu1 %v2057_v32  ;;  %1640 = vmatprep.mubr.msk.f32.mxu1 %vm1769_vm2, %v1768_v23 }
 0x1ba   : > { %1638 = vmatprep.subr.mxu1 %v1768_v23 }
 0x1bb   : > { %1639 = vmatpush3.msra.mxu1 %v2066_v33 }
 0x26c   : > { %v1595_v36 = vpop.f32.mrf.mxu1 }
 0x26d   : > { %v752_v37 = vadd.f32 %v1595_v36, %v1567_v34  ;;  %v2086_v34 = vrot.slane %v1940_v27, %v932_v12 }
 0x26e   : > { %v746_v39 = vpop.f32.mrf.mxu1 }
 0x26f   : > { %v793_v40 = vsel %vm785_vm3, %v752_v37, 0.0  ;;  %v851_v41 = vrot.slane %v752_v37, 4  ;;  %v747_v42 = vadd.f32 %v746_v39, %v617_v35  ;;  %v637_v37 = vpop.f32.mrf.mxu0 }
 0x270   : > { %v794_v43 = vrot.slane %v793_v40, 4  ;;  %v1598_v44 = vpop.f32.mrf.mxu1 }
 0x271   : > { %v873_v45 = vsel %vm785_vm3, %v851_v41, 0.0  ;;  %v786_v48 = vsel %vm785_vm3, %v747_v42, 0.0  ;;  %v850_v49 = vrot.slane %v747_v42, 4  ;;  %v762_v53 = vadd.f32 %v1598_v44, %v1570_v38 }
 0x272   : > { %v756_v47 = vpop.f32.mrf.mxu1  ;;  %v795_v51 = vadd.f32 %v794_v43, %v793_v40  ;;  %v874_v52 = vrot.slane %v873_v45, 4  ;;  %v787_v54 = vrot.slane %v786_v48, 4 }
 0x273   : > { %v757_v50 = vadd.f32 %v756_v47, %v627_v46  ;;  %v866_v55 = vsel %vm785_vm3, %v850_v49, 0.0  ;;  %v807_v59 = vsel %vm785_vm3, %v762_v53, 0.0  ;;  %v853_v60 = vrot.slane %v762_v53, 4  ;;  %v1576_v49 = vpop.f32.mrf.mxu0 }
 0x274   : > { %v796_v57 = vrot.slane %v795_v51, 2  ;;  %v875_v58 = vadd.f32 %v874_v52, %v873_v45  ;;  %v788_v61 = vadd.f32 %v787_v54, %v786_v48  ;;  %v867_v0 = vrot.slane %v866_v55, 4  ;;  %v1601_v8 = vpop.f32.mrf.mxu1 }
 0x275   : > { %v800_v56 = vsel %vm785_vm3, %v757_v50, 0.0  ;;  %v852_v63 = vrot.slane %v757_v50, 4  ;;  %v808_v1 = vrot.slane %v807_v59, 4  ;;  %v887_v4 = vsel %vm785_vm3, %v853_v60, 0.0 }
 0x276   : > { %v801_v62 = vrot.slane %v800_v56, 4  ;;  %v797_v2 = vadd.f32 %v796_v57, %v795_v51  ;;  %v876_v3 = vrot.slane %v875_v58, 2  ;;  %v789_v5 = vrot.slane %v788_v61, 2  ;;  %v766_v19 = vpop.f32.mrf.mxu1 }
 0x277   : > { %v880_v7 = vsel %vm785_vm3, %v852_v63, 0.0  ;;  %v868_v9 = vadd.f32 %v867_v0, %v866_v55  ;;  %v809_v10 = vadd.f32 %v808_v1, %v807_v59  ;;  %v888_v11 = vrot.slane %v887_v4, 4 }
 0x278   : > { %v802_v6 = vadd.f32 %v801_v62, %v800_v56  ;;  %v798_v13 = vrot.slane %v797_v2, 1  ;;  %v877_v14 = vadd.f32 %v876_v3, %v875_v58  ;;  %v881_v16 = vrot.slane %v880_v7, 4  ;;  %v1604_v41 = vpop.f32.mrf.mxu1 }
 0x279   : > { %v790_v17 = vadd.f32 %v789_v5, %v788_v61  ;;  %v869_v20 = vrot.slane %v868_v9, 2  ;;  %v810_v21 = vrot.slane %v809_v10, 2  ;;  %v889_v22 = vadd.f32 %v888_v11, %v887_v4 }
 0x27a   : > { %v803_v18 = vrot.slane %v802_v6, 2  ;;  %v799_v35 = vadd.f32 %v798_v13, %v797_v2  ;;  %v878_v36 = vrot.slane %v877_v14, 1  ;;  %v882_v38 = vadd.f32 %v881_v16, %v880_v7  ;;  %v647_v13 = vpop.f32.mrf.mxu0 }
 0x27b   : > { %v791_v39 = vrot.slane %v790_v17, 1  ;;  %v772_v25 = vadd.f32 %v1601_v8, %v1573_v15  ;;  %v870_v42 = vadd.f32 %v869_v20, %v868_v9  ;;  %v811_v43 = vadd.f32 %v810_v21, %v809_v10 }
 0x27c   : > { %v804_v40 = vadd.f32 %v803_v18, %v802_v6  ;;  %v890_v44 = vrot.slane %v889_v22, 2  ;;  %v767_v45 = vadd.f32 %v766_v19, %v637_v37  ;;  %v2088_v46 = vadd.f32 %v878_v36, %v877_v14  ;;  %v776_v6 = vpop.f32.mrf.mxu1 }
 0x27d   : > { %v1063_v47 = vadd.f32 %v2086_v34, %v799_v35  ;;  %v821_v48 = vsel %vm785_vm3, %v772_v25, 0.0  ;;  %v855_v27 = vrot.slane %v772_v25, 4  ;;  %v883_v50 = vrot.slane %v882_v38, 2 }
 0x27e   : > { %v822_v51 = vrot.slane %v821_v48, 4  ;;  %v814_v52 = vsel %vm785_vm3, %v767_v45, 0.0  ;;  %v782_v53 = vadd.f32 %v1604_v41, %v1576_v49  ;;  %v2093_v54 = vadd.f32 %v791_v39, %v790_v17 }
 0x27f   : > { %v805_v55 = vrot.slane %v804_v40, 1  ;;  %v901_v56 = vsel %vm785_vm3, %v855_v27, 0.0  ;;  %v815_v57 = vrot.slane %v814_v52, 4  ;;  %v871_v58 = vrot.slane %v870_v42, 1 }
 0x280   : > { %v823_v59 = vadd.f32 %v822_v51, %v821_v48  ;;  %v902_v60 = vrot.slane %v901_v56, 4  ;;  %v854_v61 = vrot.slane %v767_v45, 4  ;;  %v923_v62 = vadd.f32 %v2088_v46, %v799_v35 }
 0x281   : > { %v812_v63 = vrot.slane %v811_v43, 1  ;;  %v891_v0 = vadd.f32 %v890_v44, %v889_v22  ;;  %v816_v1 = vadd.f32 %v815_v57, %v814_v52  ;;  %v884_v2 = vadd.f32 %v883_v50, %v882_v38 }
 0x282   : > { %v824_v3 = vrot.slane %v823_v59, 2  ;;  %v894_v4 = vsel %vm785_vm3, %v854_v61, 0.0  ;;  %v835_v5 = vsel %vm785_vm3, %v782_v53, 0.0  ;;  %v1071_v7 = vmax.f32 %v1063_v47, 0.0 }
 0x283   : > { %v806_v8 = vadd.f32 %v805_v55, %v804_v40  ;;  %v817_v9 = vrot.slane %v816_v1, 2  ;;  %v895_v10 = vrot.slane %v894_v4, 4  ;;  %v903_v12 = vadd.f32 %v902_v60, %v901_v56 }
 0x284   : > { %v825_v11 = vadd.f32 %v824_v3, %v823_v59  ;;  %v836_v14 = vrot.slane %v835_v5, 4  ;;  %v857_v15 = vrot.slane %v782_v53, 4  ;;  %v1062_v16 = vadd.f32 %v2086_v34, %v2093_v54 }
 0x285   : > { %v818_v17 = vadd.f32 %v817_v9, %v816_v1  ;;  %v896_v18 = vadd.f32 %v895_v10, %v894_v4  ;;  %v777_v19 = vadd.f32 %v776_v6, %v647_v13  ;;  %v813_v20 = vadd.f32 %v812_v63, %v811_v43 }
 0x286   : > { %v885_v21 = vrot.slane %v884_v2, 1  ;;  %v837_v22 = vadd.f32 %v836_v14, %v835_v5  ;;  %v915_v35 = vsel %vm785_vm3, %v857_v15, 0.0  ;;  %v1064_v36 = vadd.f32 %v2086_v34, %v806_v8 }
 0x287   : > { %v819_v37 = vrot.slane %v818_v17, 1  ;;  %v897_v38 = vrot.slane %v896_v18, 2  ;;  %v916_v39 = vrot.slane %v915_v35, 4  ;;  %v826_v40 = vrot.slane %v825_v11, 1 }
 0x288   : > { %v904_v25 = vrot.slane %v903_v12, 2  ;;  %v838_v41 = vrot.slane %v837_v22, 2  ;;  %v828_v44 = vsel %vm785_vm3, %v777_v19, 0.0  ;;  %v2104_v43 = vadd.f32 %v871_v58, %v870_v42 }
 0x289   : > { %v820_v45 = vadd.f32 %v819_v37, %v818_v17  ;;  %v898_v47 = vadd.f32 %v897_v38, %v896_v18  ;;  %v917_v48 = vadd.f32 %v916_v39, %v915_v35  ;;  %v829_v27 = vrot.slane %v828_v44, 4 }
 0x28a   : > { %v892_v49 = vrot.slane %v891_v0, 1  ;;  %v2106_v50 = vadd.f32 %v885_v21, %v884_v2  ;;  %v839_v51 = vadd.f32 %v838_v41, %v837_v22  ;;  %v1086_v52 = vrot.slane %v1071_v7, 7 }
 0x28b   : > { %v899_v53 = vrot.slane %v898_v47, 1  ;;  %v918_v55 = vrot.slane %v917_v48, 2  ;;  %v830_v56 = vadd.f32 %v829_v27, %v828_v44  ;;  %v1072_v57 = vmax.f32 %v1064_v36, 0.0 }
 0x28c   : > { %v905_v59 = vadd.f32 %v904_v25, %v903_v12  ;;  %v1066_v60 = vadd.f32 %v2086_v34, %v820_v45  ;;  %v840_v61 = vrot.slane %v839_v51, 1  ;;  %v1070_v63 = vmax.f32 %v1062_v16, 0.0 }
 0x28d   : > { %v1065_v1 = vadd.f32 %v2086_v34, %v813_v20  ;;  %v827_v3 = vadd.f32 %v826_v40, %v825_v11  ;;  %v831_v42 = vrot.slane %v830_v56, 2  ;;  %v924_v58 = vadd.f32 %v2106_v50, %v806_v8 }
 0x28e   : > { %v919_v2 = vadd.f32 %v918_v55, %v917_v48  ;;  %v856_v4 = vrot.slane %v777_v19, 4  ;;  %v935_v5 = vadd.f32 %v2086_v34, %v923_v62  ;;  %v2112_v6 = vadd.f32 %v892_v49, %v891_v0 }
 0x28f   : > { %v2114_v7 = vadd.f32 %v899_v53, %v898_v47  ;;  %v841_v9 = vadd.f32 %v840_v61, %v839_v51  ;;  %v1088_v10 = vrot.slane %v1072_v57, 6  ;;  %v906_v12 = vrot.slane %v905_v59, 1 }
 0x290   : > { %v1074_v13 = vmax.f32 %v1066_v60, 0.0  ;;  %v832_v14 = vadd.f32 %v831_v42, %v830_v56  ;;  %v922_v11 = vadd.f32 %v2104_v43, %v2093_v54  ;;  %v1087_v8 = vsel %vm965_vm4, %v1086_v52, %v1070_v63 }
 0x291   : > { %v1073_v15 = vmax.f32 %v1065_v1, 0.0  ;;  %v1067_v16 = vadd.f32 %v2086_v34, %v827_v3  ;;  %v936_v62 = vadd.f32 %v2086_v34, %v924_v58  ;;  %v920_v0 = vrot.slane %v919_v2, 1 }
 0x292   : > { %v833_v17 = vrot.slane %v832_v14, 1  ;;  %v908_v18 = vsel %vm785_vm3, %v856_v4, 0.0  ;;  %v925_v19 = vadd.f32 %v2112_v6, %v813_v20  ;;  %v926_v21 = vadd.f32 %v2114_v7, %v820_v45 }
 0x293   : > { %v1069_v22 = vadd.f32 %v2086_v34, %v841_v9  ;;  %v909_v35 = vrot.slane %v908_v18, 4  ;;  %v1089_v54 = vsel %vm968_vm5, %v1088_v10, %v1087_v8  ;;  %v2126_v36 = vadd.f32 %v906_v12, %v905_v59 }
 0x294   : > { %v1092_v37 = vrot.slane %v1074_v13, 4  ;;  %v834_v38 = vadd.f32 %v833_v17, %v832_v14  ;;  %v943_v39 = vmax.f32 %v935_v5, 0.0  ;;  %v1090_v40 = vrot.slane %v1073_v15, 5 }
 0x295   : > { %v1075_v25 = vmax.f32 %v1067_v16, 0.0  ;;  %v910_v41 = vadd.f32 %v909_v35, %v908_v18  ;;  %v934_v44 = vadd.f32 %v2086_v34, %v922_v11  ;;  %v944_v47 = vmax.f32 %v936_v62, 0.0 }
 0x296   : > { %v2129_v48 = vadd.f32 %v920_v0, %v919_v2  ;;  %v1068_v20 = vadd.f32 %v2086_v34, %v834_v38  ;;  %v938_v45 = vadd.f32 %v2086_v34, %v926_v21  ;;  %v1091_v27 = vsel %vm971_vm6, %v1090_v40, %v1089_v54 }
 0x297   : > { %v1077_v49 = vmax.f32 %v1069_v22, 0.0  ;;  %v911_v51 = vrot.slane %v910_v41, 2  ;;  %v937_v52 = vadd.f32 %v2086_v34, %v925_v19  ;;  %v927_v53 = vadd.f32 %v2126_v36, %v827_v3 }
 0x298   : > { %v1093_v55 = vsel %vm974_vm7, %v1092_v37, %v1091_v27  ;;  %v1076_v56 = vmax.f32 %v1068_v20, 0.0  ;;  %v964_v57 = vrot.slane %v943_v39, 7  ;;  %v1094_v59 = vrot.slane %v1075_v25, 3 }
 0x299   : > { %v912_v60 = vadd.f32 %v911_v51, %v910_v41  ;;  %v942_v61 = vmax.f32 %v934_v44, 0.0  ;;  %v967_v63 = vrot.slane %v944_v47, 6  ;;  %v929_v1 = vadd.f32 %v2129_v48, %v841_v9 }
 0x29a   : > { %v1096_v42 = vrot.slane %v1076_v56, 2  ;;  %v946_v58 = vmax.f32 %v938_v45, 0.0  ;;  %v1098_v2 = vrot.slane %v1077_v49, 1  ;;  %v1095_v5 = vsel %vm977_vm8, %v1094_v59, %v1093_v55 }
 0x29b   : > { %v913_v4 = vrot.slane %v912_v60, 1  ;;  %v945_v10 = vmax.f32 %v937_v52, 0.0  ;;  %v939_v3 = vadd.f32 %v2086_v34, %v927_v53  ;;  %v966_v11 = vsel %vm965_vm4, %v964_v57, %v942_v61 }
 0x29c   : > { %v1097_v12 = vsel %vm980_vm9, %v1096_v42, %v1095_v5  ;;  %v941_v8 = vadd.f32 %v2086_v34, %v929_v1  ;;  %v969_v9 = vsel %vm968_vm5, %v967_v63, %v966_v11  ;;  %v973_v15 = vrot.slane %v946_v58, 4 }
 0x29d   : > { %v914_v13 = vadd.f32 %v913_v4, %v912_v60  ;;  %v1099_v14 = vsel %vm983_vm10, %v1098_v2, %v1097_v12  ;;  %v1182_v62 = vadd.f32 %v2086_v34, %v2088_v46  ;;  %v970_v0 = vrot.slane %v945_v10, 5 }
 0x29e   : > { %1641 = vmatmul.mubr.msk.f32.vlgmr.msra.gmra.mxu1 %vm413_vm1, %v1099_v14  ;;  %v947_v17 = vmax.f32 %v939_v3, 0.0  ;;  %v1183_v18 = vadd.f32 %v2086_v34, %v2106_v50  ;;  %v949_v21 = vmax.f32 %v941_v8, 0.0  ;;  %v1185_v46 = vadd.f32 %v2086_v34, %v2114_v7 }
 0x29f   : > { %v928_v16 = vadd.f32 %v914_v13, %v834_v38  ;;  %v972_v22 = vsel %vm971_vm6, %v970_v0, %v969_v9  ;;  %v1190_v37 = vmax.f32 %v1182_v62, 0.0  ;;  %v1181_v38 = vadd.f32 %v2086_v34, %v2104_v43 }
 0x2a0   : > { %v975_v54 = vsel %vm974_vm7, %v973_v15, %v972_v22  ;;  %v976_v39 = vrot.slane %v947_v17, 3  ;;  %v1191_v40 = vmax.f32 %v1183_v18, 0.0  ;;  %v1184_v50 = vadd.f32 %v2086_v34, %v2112_v6 }
 0x2a1   : > { %v940_v19 = vadd.f32 %v2086_v34, %v928_v16  ;;  %v982_v41 = vrot.slane %v949_v21, 1  ;;  %v1205_v20 = vrot.slane %v1190_v37, 7  ;;  %v1189_v45 = vmax.f32 %v1181_v38, 0.0 }
 0x2a2   : > { %v978_v44 = vsel %vm977_vm8, %v976_v39, %v975_v54  ;;  %v1207_v49 = vrot.slane %v1191_v40, 6  ;;  %v1193_v43 = vmax.f32 %v1185_v46, 0.0  ;;  %v1187_v51 = vadd.f32 %v2086_v34, %v914_v13 }
 0x2a3   : > { %v948_v35 = vmax.f32 %v940_v19, 0.0  ;;  %v1192_v7 = vmax.f32 %v1184_v50, 0.0  ;;  %v1186_v52 = vadd.f32 %v2086_v34, %v2126_v36  ;;  %v1206_v6 = vsel %vm965_vm4, %v1205_v20, %v1189_v45 }
 0x2a4   : > { %v1211_v53 = vrot.slane %v1193_v43, 4  ;;  %v1195_v55 = vmax.f32 %v1187_v51, 0.0  ;;  %v1208_v56 = vsel %vm968_vm5, %v1207_v49, %v1206_v6 }
 0x2a5   : > { %v979_v25 = vrot.slane %v948_v35, 2  ;;  %v1209_v57 = vrot.slane %v1192_v7, 5  ;;  %v1194_v59 = vmax.f32 %v1186_v52, 0.0 }
 0x2a6   : > { %v1215_v60 = vrot.slane %v1195_v55, 2 }
 0x2a7   : > { %v981_v47 = vsel %vm980_vm9, %v979_v25, %v978_v44  ;;  %v1210_v36 = vsel %vm971_vm6, %v1209_v57, %v1208_v56  ;;  %v1213_v61 = vrot.slane %v1194_v59, 3 }
 0x2a8   : > { %v984_v27 = vsel %vm983_vm10, %v982_v41, %v981_v47 }
 0x2a9   : > { %1622 = vmatmul.mubr.msk.f32.vlgmr.msra.gmra.mxu0 %vm413_vm1, %v984_v27 }
 0x2aa   : > { %1644 = vmatpush3.msra.mxu0 %v2003_v24  ;;  %1659 = vmatprep.mubr.msk.f32.mxu0 %vm1769_vm2, %v1768_v23  ;;  %v1188_v24 = vadd.f32 %v2086_v34, %v2129_v48 }
 0x2ab   : > { %1645 = vmatprep.subr.mxu0 %v1768_v23 }
 0x2ac   : > { %1646 = vmatpush3.msra.mxu0 %v2012_v26  ;;  %v1212_v26 = vsel %vm974_vm7, %v1211_v53, %v1210_v36  ;;  %v1196_v63 = vmax.f32 %v1188_v24, 0.0 }
 0x2ad   : > { %1647 = vmatprep.subr.mxu0 %v1768_v23 }
 0x2ae   : > { %1648 = vmatpush3.msra.mxu0 %v2021_v28  ;;  %v1214_v28 = vsel %vm977_vm8, %v1213_v61, %v1212_v26  ;;  %v1217_v34 = vrot.slane %v1196_v63, 1 }
 0x2af   : > { %1649 = vmatprep.subr.mxu0 %v1768_v23 }
 0x2b0   : > { %1650 = vmatpush3.msra.mxu0 %v2030_v29  ;;  %v1216_v29 = vsel %vm980_vm9, %v1215_v60, %v1214_v28 }
 0x2b1   : > { %1651 = vmatprep.subr.mxu0 %v1768_v23 }
 0x2b2   : > { %1652 = vmatpush3.msra.mxu0 %v2039_v30  ;;  %v1218_v30 = vsel %vm983_vm10, %v1217_v34, %v1216_v29 }
 0x2b3   : > { %1653 = vmatprep.subr.mxu0 %v1768_v23 }
 0x2b4   : > { %1654 = vmatpush3.msra.mxu0 %v2048_v31  ;;  %v1418_v31 = vld [vmem:[%s2251_s4] ss:$0 sm:$0xff] }
 0x2b5   : > { %1655 = vmatprep.subr.mxu0 %v1768_v23 }
 0x2b6   : > { %1656 = vmatpush3.msra.mxu0 %v2057_v32 }
 0x2b7   : > { %1657 = vmatprep.subr.mxu0 %v1768_v23 }
 0x2b8   : > { %1658 = vmatpush3.msra.mxu0 %v2066_v33 }
 0x2b9   : > { %1660 = vmatmul.mubr.msk.f32.vlgmr.msra.gmra.mxu0 %vm413_vm1, %v1218_v30 }
 0x35e   : > { %v1168_v48 = vpop.f32.mrf.mxu1 }
 0x35f   : > { %v1169_v1 = vadd.f32 %v1418_v31, %v1168_v48 }
 0x360   : > { %v1642_v42 = vpop.f32.mrf.mxu1 }
 0x361   : > { %v1172_v58 = vmax.f32 %v1169_v1, 0.0 }
 0x363   : > { %v1173_v32 = vmin.f32 %v1172_v58, 6.0 }
 0x365   : > { %v1174_v2 = vmul.f32 0.16666667, %v1173_v32 }
 0x367   : > { %1176 = vrot.lane.b32.xlu0 %v1174_v2, %s1770_s14 }
 0x369   : > { %v1053_v23 = vpop.f32.mrf.mxu0 }
 0x36a   : > { %v1054_v33 = vadd.f32 %v1418_v31, %v1053_v23 }
 0x36b   : > { %v1623_v4 = vpop.f32.mrf.mxu0 }
 0x36c   : > { %v1057_v5 = vmax.f32 %v1054_v33, 0.0 }
 0x36e   : > { %v1058_v10 = vmin.f32 %v1057_v5, 6.0  ;;  %1301 = vrot.lane.b32.xlu1 %v1057_v5, %s1771_s17 }
 0x370   : > { %v1060_v3 = vmul.f32 0.16666667, %v1058_v10 }
 0x372   : > { %1061 = vst.msk [vmem:[%s218_s23] sm:$0xff] %vm271_vm0, %v1060_v3 }
 0x379   : > { %v1287_v12 = vpop.f32.mrf.mxu0 }
 0x37a   : > { %v1288_v13 = vadd.f32 %v1418_v31, %v1287_v12 }
 0x37b   : > { %v1661_v14 = vpop.f32.mrf.mxu0 }
 0x37c   : > { %v1291_v11 = vmax.f32 %v1288_v13, 0.0 }
 0x37e   : > { %v1292_v8 = vmin.f32 %v1291_v11, 6.0 }
 0x380   : > { %v1293_v9 = vmul.f32 0.16666667, %v1292_v8 }
 0x382   : > { %1295 = vrot.lane.b32.xlu0 %v1293_v9, %s1772_s25 }
 0x3d9   : > { %v1177_v15 = vpop.permute.xlu0 %1176 }
 0x3da   : > { %1180 = vst.msk [vmem:[%s218_s23] sm:$0xff] %vm1179_vm11, %v1177_v15 }
 0x3e0   : > { %v1302_v62 = vpop.permute.xlu1 %1301 }
 0x3f4   : > { %v1296_v16 = vpop.permute.xlu0 %1295 }
 0x3f5   : > { %1299 = vst.msk [vmem:[%s218_s23] sm:$0xff] %vm1298_vm12, %v1296_v16 }
 0x3f6   : > { %1305 = vst.msk [vmem:[%s218_s23] sm:$0xff] %vm1304_vm13, %v1302_v62 }
 0x3f7   : > { %1719 = shalt.err (!%p1716_p3)
}
 0x3f8   : > { %s1720_s13 = scalar_lea.hbm %s2204_s8, 128  ;;  %s1724_s16 = scalar_lea.hbm %s2252_s5, 256 }
 0x3f9   : > { %p1721_p4 = scmp.ne.s32.totalorder %s2204_s8, %s1720_s13  ;;  %p1725_p9 = scmp.lt.s32.totalorder %s2204_s8, %s2252_s5 }
 0x3fa   : > { %p1726_p10 = scmp.lt.s32.totalorder %s1724_s16, %s1720_s13 }
 0x3fb   : > { %p1722_p7 = pnand %p1721_p4, %p1842_p5 }
 0x3fc   : > { %p1727_p11 = por %p1726_p10, %p1725_p9 }
 0x3fd   : > { %p1723_p8 = pneg %p1722_p7 }
 0x3ff   : > { %p1728_p12 = pnand %p1727_p11, %p1723_p8 }
 0x401   : > { %1731 = shalt.err (!%p1728_p12)
}
 0x402   : > { %1662 = dma.vmem_to_hbm [thread:$0]  (%p1842_p5), %s2206_s30, 128, %s2204_s8, %s1307_s10  }
 0x403 PF: > { %p1668_p13 = scmp.ge.s32.totalorder %s1766_s21, 2  ;;  %s1332_s25 = sand.u32 1, %s1754_s18  }
 0x404   : > { %s1333_s26 = scalar_lea.sflag [#allocation3], %s1332_s25 }
 0x405   : > { %p1665_p0 = pnand %p1668_p13, %p1846_p6 }
 0x407   : > { %p1666_p1 = pneg %p1665_p0 }
 0x409   : > { %1749 = dma.done.wait (%p1666_p1), %s1333_s26, 128  }
 0x40a   : > { %1751 = vsyncadd (%p1666_p1), %s1333_s26, 4294967168  ;;  %p15_p2 = scmp.ge.s32.totalorder %s1829_s24, 4   ;;  %s2255_s18 = smov %s1758_s19 }
 0x40b   : > { %s2256_s19 = smov %s1762_s20  ;;  %s2257_s20 = smov %s1840_s27 }
 0x40c   : > { %s2258_s21 = smov %s1829_s24  ;;  %17 = sbr.rel (!%p15_p2) target bundleno = 3 (0x3), region = 75 }
 0x411   :  { %1338 = vsyncpa [#allocation3], 1 }
 0x412   :  { %1340 = vsyncpa [#allocation3 + $0x1], 1 }

</bundles_post_ra>
